<compile_context>
chip_gen: v6e
topology: v6e:2x2x1
jax: 0.10.0
libtpu: 0.0.40
codegen_flags: <defaults>
</compile_context>

<pallas_src>
import functools

import jax
import jax.numpy as jnp
import numpy as np
from jax.experimental import pallas as pl
from jax.experimental.pallas import tpu as pltpu


def _round_up(x, m):
    return ((x + m - 1) // m) * m


# Bounds the unrolled per-128-lane chunk loop inside the kernel (<= 16 chunks).
_MAX_SPATIAL_TILE = 2048


def _cbp_kernel(x1_ref, x2_ref, w1_ref, w2_ref, out_ref, acc_ref,
                *, d_pad, tn, hw, ragged):
    """One (batch, spatial-tile) grid step.

    x*_ref : (1, C, TN) activation tile in its native dtype (spatial in lanes).
    w*_ref : (2*Dp, C) fused count-sketch + forward-DFT weights (compute dtype).
    out_ref: (1, 1, 2*Dp) pooled spectrum row (f32), written on the last tile.
    acc_ref: (2*Dp, 128) f32 lane-dense partial-sum accumulator.
    """
    t = pl.program_id(1)

    @pl.when(t == 0)
    def _():
        acc_ref[...] = jnp.zeros_like(acc_ref)

    x1 = x1_ref[0]                      # (C1, TN)
    x2 = x2_ref[0]                      # (C2, TN)

    if ragged:
        # Zero spatial lanes past the true H*W (the edge block holds garbage).
        lane = jax.lax.broadcasted_iota(jnp.int32, (1, tn), 1)
        valid = (t * tn + lane) < hw
        x1 = jnp.where(valid, x1, 0)
        x2 = jnp.where(valid, x2, 0)

    # Cast after load: no extra pad/cast pass over the activations in HBM.
    x1 = x1.astype(w1_ref.dtype)
    x2 = x2.astype(w2_ref.dtype)

    # Fused count-sketch + forward DFT: one MXU matmul per input.
    # Rows [0, Dp) carry the real spectrum, rows [Dp, 2*Dp) the imaginary one.
    f1 = jnp.dot(w1_ref[...], x1, preferred_element_type=jnp.float32)  # (2Dp, TN)
    f2 = jnp.dot(w2_ref[...], x2, preferred_element_type=jnp.float32)  # (2Dp, TN)

    # Complex product fused into lane-dense partial-sum accumulation:
    # 128-lane chunks, pure VPU multiply-adds, no (2Dp, TN) pr/pi temporaries,
    # no per-tile cross-lane reduce, no masked 1-lane accumulator stores.
    acc_r = acc_ref[:d_pad, :]
    acc_i = acc_ref[d_pad:, :]
    for c in range(tn // 128):
        s = slice(c * 128, (c + 1) * 128)
        a1r, a1i = f1[:d_pad, s], f1[d_pad:, s]
        a2r, a2i = f2[:d_pad, s], f2[d_pad:, s]
        acc_r = acc_r + a1r * a2r - a1i * a2i
        acc_i = acc_i + a1r * a2i + a1i * a2r
    acc_ref[:d_pad, :] = acc_r
    acc_ref[d_pad:, :] = acc_i

    @pl.when(t == pl.num_programs(1) - 1)
    def _():
        # Single 128->1 reduce per batch element, emitted as a lane-dense
        # (1, 2*Dp) row via an MXU ones-vector contraction.
        ones_row = jnp.ones((1, 128), jnp.float32)
        pooled = jax.lax.dot_general(
            ones_row, acc_ref[...],
            dimension_numbers=(((1,), (1,)), ((), ())),
            preferred_element_type=jnp.float32)            # (1, 2*Dp)
        out_ref[0] = pooled.astype(out_ref.dtype)


def _vmem_capacity_bytes():
    """Physical VMEM per TensorCore (128 MiB on v5e/v6e, 64 MiB on v7x)."""
    try:
        info = pltpu.get_tpu_info()
        for attr in ("vmem_capacity_bytes", "vmem_bytes", "vmem_size_bytes"):
            v = getattr(info, attr, None)
            if v:
                return int(v)
    except Exception:
        pass
    return 64 * 1024 * 1024   # conservative default (v7x-sized)


def _pick_tile_and_vmem(hw_k, d_pad, c1, c2, x_itemsize, w_itemsize, requested):
    """Pick the spatial tile TN (lanes) and the kernel's vmem_limit_bytes.

    Generation-aware: ~77 MiB limit on v5e/v6e (128 MiB physical VMEM),
    ~38 MiB on v7x (64 MiB physical).  The TN budget accounts for the
    double-buffered activation tiles, single-buffered weights, in-kernel
    casts, f32 spectra and the lane-dense accumulator -- not just the
    intermediates.
    """
    vmem_limit = min(int(_vmem_capacity_bytes() * 0.6), 100 * 1024 * 1024)
    budget = int(vmem_limit * 0.8)                      # compiler headroom

    # TN-independent VMEM residents.
    fixed = (2 * d_pad) * (c1 + c2) * w_itemsize        # w1 + w2 (Buffered(1))
    fixed += (2 * d_pad) * 128 * 4                      # lane-dense accumulator
    fixed += 2 * 2 * (2 * d_pad) * 4                    # double-buffered out row
    fixed += 4 * d_pad * 128 * 4                        # per-chunk product temps

    # Per-spatial-lane VMEM (proportional to TN).
    per_lane = 2 * (c1 + c2) * x_itemsize               # 2x double-buffered acts
    per_lane += (c1 + c2) * w_itemsize                  # in-kernel casts of x1/x2
    per_lane += 2 * (2 * d_pad) * 4                     # f1, f2 spectra (f32)

    avail = max(budget - fixed, per_lane * 128)
    tn = (avail // per_lane) // 128 * 128
    tn = int(max(128, min(tn, _MAX_SPATIAL_TILE)))
    if requested is not None:
        tn = min(tn, max(128, _round_up(requested, 128)))
    tn = min(tn, max(128, (hw_k // 128) * 128))         # keep block within H*W
    return tn, vmem_limit


def compact_bilinear_pooling(bottom1, bottom2, sketch1, sketch2, output_dim,
                             *, spatial_tile=None, compute_dtype=jnp.bfloat16):
    """bottom1: (B, C1, H, W), bottom2: (B, C2, H, W) -> (B, output_dim).

    Matches CompactBilinearPooling.forward with sum_pool=True.
    """
    B, C1, H, W = bottom1.shape
    B2, C2, H2, W2 = bottom2.shape
    assert (B, H, W) == (B2, H2, W2)
    HW = H * W
    D = output_dim
    Dp = _round_up(D, 128)                 # lane-pad the frequency axis

    # Activations stay in their native (B, C, H*W) layout & dtype: the reshape
    # is free and the kernel masks/casts in-register (no extra HBM pass).
    x1 = bottom1.reshape(B, C1, HW)
    x2 = bottom2.reshape(B, C2, HW)
    hw_k = HW
    if HW < 128:                           # tiny inputs: pad once to a lane tile
        x1 = jnp.pad(x1, ((0, 0), (0, 0), (0, 128 - HW)))
        x2 = jnp.pad(x2, ((0, 0), (0, 0), (0, 128 - HW)))
        hw_k = 128

    # DFT bases (symmetric), built in float64 on host for exact weights.
    n = np.arange(D)
    ang = 2.0 * np.pi * np.outer(n, n) / D
    cos64, sin64 = np.cos(ang), np.sin(ang)
    cos_f32 = jnp.asarray(cos64.astype(np.float32))
    sin_f32 = jnp.asarray(sin64.astype(np.float32))

    # Fused (count-sketch + forward DFT), transposed for channels-in-sublane /
    # spatial-in-lane activations:
    #   W[k, c] = cos[k, :] @ sketch[c, :],  W[Dp+k, c] = -sin[k, :] @ sketch[c, :]
    def fused_forward(sketch):
        s = np.asarray(jax.device_get(sketch), np.float64)        # (C, D)
        w = np.zeros((2 * Dp, s.shape[0]), np.float64)
        w[:D, :] = cos64 @ s.T
        w[Dp:Dp + D, :] = -(sin64 @ s.T)
        return jnp.asarray(w.astype(np.float32)).astype(compute_dtype)

    # NOTE: for very large output_dim pass compute_dtype=jnp.float32 (bf16
    # weight quantization error grows with D because the IDFT cancels heavily).
    w1 = fused_forward(sketch1)                                   # (2*Dp, C1)
    w2 = fused_forward(sketch2)                                   # (2*Dp, C2)

    x_itemsize = jnp.dtype(x1.dtype).itemsize
    w_itemsize = jnp.dtype(compute_dtype).itemsize
    TN, vmem_limit = _pick_tile_and_vmem(hw_k, Dp, C1, C2, x_itemsize,
                                         w_itemsize, spatial_tile)
    T = pl.cdiv(hw_k, TN)
    ragged = (hw_k % TN) != 0

    kernel = functools.partial(_cbp_kernel, d_pad=Dp, tn=TN, hw=HW,
                               ragged=ragged)

    flops = 2 * (2 * Dp) * (C1 + C2) * hw_k * B + 8 * Dp * hw_k * B
    bytes_accessed = (B * (C1 + C2) * hw_k * x_itemsize
                      + (2 * Dp) * (C1 + C2) * w_itemsize
                      + B * 2 * Dp * 4)
    cost = pl.CostEstimate(flops=int(flops), transcendentals=0,
                           bytes_accessed=int(bytes_accessed))

    # TODO(synk): sum_pool=False variant (per-pixel (B, H, W, D) output) would
    # drop the accumulator and use a spatial out_spec.
    # TODO(synk): v7x / B==1: split the spatial reduction across the 2
    # TensorCores (grid (B, 2, T//2), per-core partial spectra combined in the
    # wrapper).
    # TODO(synk): for C1+C2 far below the MXU contraction width, a
    # block-diagonal (4*Dp, C1+C2) weight would fuse the two forward matmuls;
    # pl.Buffered(3) on the activation specs would help when TN is 128.
    spec = pl.pallas_call(
        kernel,
        out_shape=jax.ShapeDtypeStruct((B, 1, 2 * Dp), jnp.float32),
        grid_spec=pltpu.PrefetchScalarGridSpec(
            num_scalar_prefetch=0,
            grid=(B, T),
            in_specs=[
                pl.BlockSpec((1, C1, TN), lambda b, t: (b, 0, t)),
                pl.BlockSpec((1, C2, TN), lambda b, t: (b, 0, t)),
                # Grid-invariant constants: single-buffered (halves their VMEM).
                pl.BlockSpec((2 * Dp, C1), lambda b, t: (0, 0),
                             pipeline_mode=pl.Buffered(1)),
                pl.BlockSpec((2 * Dp, C2), lambda b, t: (0, 0),
                             pipeline_mode=pl.Buffered(1)),
            ],
            out_specs=pl.BlockSpec((1, 1, 2 * Dp), lambda b, t: (b, 0, 0)),
            scratch_shapes=[pltpu.VMEM((2 * Dp, 128), jnp.float32)],
        ),
        compiler_params=pltpu.CompilerParams(
            dimension_semantics=("parallel", "arbitrary"),
            vmem_limit_bytes=vmem_limit,
        ),
        cost_estimate=cost,
    )(x1, x2, w1, w2)

    # Inverse DFT (real part) with 1/D folded in: one batched f32 matmul over
    # all B outside the kernel (the kernel output is the pooled spectrum).
    pooled = spec.reshape(B, 2 * Dp)
    pr = pooled[:, :D]
    pi = pooled[:, Dp:Dp + D]
    out = (jnp.dot(pr, cos_f32, precision=jax.lax.Precision.HIGHEST)
           - jnp.dot(pi, sin_f32, precision=jax.lax.Precision.HIGHEST)) * (1.0 / D)
    return out


def make_sketch_matrix(rand_h, rand_s, output_dim):
    """Dense count-sketch matrix S[i, rand_h[i]] = rand_s[i], shape (C, D)."""
    input_dim = rand_h.shape[0]
    s = np.zeros((input_dim, output_dim), dtype=np.float32)
    s[np.arange(input_dim), rand_h] = rand_s.astype(np.float32)
    return jnp.asarray(s)


def reference_cbp(bottom1, bottom2, sketch1, sketch2, output_dim):
    """Plain-JAX reference using jnp.fft (mirrors the PyTorch forward)."""
    B, C1, H, W = bottom1.shape
    C2 = bottom2.shape[1]
    x1 = jnp.transpose(bottom1, (0, 2, 3, 1)).reshape(-1, C1)
    x2 = jnp.transpose(bottom2, (0, 2, 3, 1)).reshape(-1, C2)
    s1 = jnp.dot(x1, sketch1, precision=jax.lax.Precision.HIGHEST)
    s2 = jnp.dot(x2, sketch2, precision=jax.lax.Precision.HIGHEST)
    f1 = jnp.fft.fft(s1.astype(jnp.complex64), axis=-1)
    f2 = jnp.fft.fft(s2.astype(jnp.complex64), axis=-1)
    cbp = jnp.real(jnp.fft.ifft(f1 * f2, axis=-1))
    cbp = cbp.reshape(B, H, W, output_dim)
    return cbp.sum(axis=(1, 2)).astype(jnp.float32)


if __name__ == "__main__":
    # Small, deterministic setup consistent with the module.
    B, C1, C2, H, W = 2, 4, 4, 16, 16
    OUTPUT_DIM = 16

    rng = np.random.RandomState(0)
    rand_h_1 = rng.randint(OUTPUT_DIM, size=C1)
    rand_s_1 = 2 * rng.randint(2, size=C1) - 1
    rand_h_2 = rng.randint(OUTPUT_DIM, size=C2)
    rand_s_2 = 2 * rng.randint(2, size=C2) - 1
    sketch1 = make_sketch_matrix(rand_h_1, rand_s_1, OUTPUT_DIM)   # (C1, D)
    sketch2 = make_sketch_matrix(rand_h_2, rand_s_2, OUTPUT_DIM)   # (C2, D)

    key = jax.random.PRNGKey(0)
    k1, k2, k3, k4 = jax.random.split(key, 4)
    bottom1 = jax.random.normal(k1, (B, C1, H, W), dtype=jnp.float32)
    bottom2 = jax.random.normal(k2, (B, C2, H, W), dtype=jnp.float32)

    ref = np.asarray(reference_cbp(bottom1, bottom2, sketch1, sketch2,
                                   OUTPUT_DIM))

    # 1) Exact-math check (f32 operands); spatial_tile=128 forces the
    #    multi-tile accumulation path (2 spatial tiles per batch element).
    out_f32 = compact_bilinear_pooling(bottom1, bottom2, sketch1, sketch2,
                                       OUTPUT_DIM, compute_dtype=jnp.float32,
                                       spatial_tile=128)
    out_f32 = np.asarray(jax.block_until_ready(out_f32))
    np.testing.assert_allclose(out_f32, ref, rtol=2e-3, atol=2e-3)

    # 2) Default fast path: bf16 matmul operands, f32 MXU accumulation,
    #    single 256-lane spatial tile.  Tolerance reflects bf16 quantization.
    out_bf16 = compact_bilinear_pooling(bottom1, bottom2, sketch1, sketch2,
                                        OUTPUT_DIM)
    out_bf16 = np.asarray(jax.block_until_ready(out_bf16))
    scale = float(np.max(np.abs(ref))) + 1e-6
    np.testing.assert_allclose(out_bf16, ref, rtol=5e-2, atol=5e-2 * scale)

    # 3) Ragged spatial size (H*W = 144 is not a multiple of the 128-lane
    #    tile): exercises the in-kernel edge-tile mask and B == 1.
    Hr = Wr = 12
    b1r = jax.random.normal(k3, (1, C1, Hr, Wr), dtype=jnp.float32)
    b2r = jax.random.normal(k4, (1, C2, Hr, Wr), dtype=jnp.float32)
    ref_r = np.asarray(reference_cbp(b1r, b2r, sketch1, sketch2, OUTPUT_DIM))
    out_r = compact_bilinear_pooling(b1r, b2r, sketch1, sketch2, OUTPUT_DIM,
                                     compute_dtype=jnp.float32)
    out_r = np.asarray(jax.block_until_ready(out_r))
    np.testing.assert_allclose(out_r, ref_r, rtol=2e-3, atol=2e-3)

    print("KERNEL_OK")
</pallas_src>

<mosaic_0001>
module attributes {stable_mosaic.version = 11 : i64} {
  func.func @_cbp_kernel(%arg0: i32, %arg1: i32, %arg2: memref<1x4x128xf32, #tpu.memory_space<vmem>>, %arg3: memref<1x4x128xf32, #tpu.memory_space<vmem>>, %arg4: memref<256x4xf32, #tpu.memory_space<vmem>>, %arg5: memref<256x4xf32, #tpu.memory_space<vmem>>, %arg6: memref<1x1x256xf32, #tpu.memory_space<vmem>>, %arg7: memref<256x128xf32, #tpu.memory_space<vmem>>) attributes {dimension_semantics = [#tpu.dimension_semantics<parallel>, #tpu.dimension_semantics<arbitrary>], iteration_bounds = array<i64: 2, 2>, scalar_prefetch = 0 : i64, scratch_operands = 1 : i64, tpu.core_type = #tpu.core_type<tc>, window_params = [{transform_indices = @transform_0, window_bounds = array<i64: 1, 4, 128>}, {transform_indices = @transform_1, window_bounds = array<i64: 1, 4, 128>}, {pipeline_mode = #tpu.pipeline_mode<synchronous>, transform_indices = @transform_2, window_bounds = array<i64: 256, 4>}, {pipeline_mode = #tpu.pipeline_mode<synchronous>, transform_indices = @transform_3, window_bounds = array<i64: 256, 4>}, {transform_indices = @transform_4, window_bounds = array<i64: 1, 1, 256>}]} {
    %c0_i32 = arith.constant 0 : i32
    %0 = arith.cmpi eq, %arg1, %c0_i32 : i32
    %1 = arith.extui %0 : i1 to i32
    %c0_i32_0 = arith.constant 0 : i32
    %2 = arith.cmpi ne, %1, %c0_i32_0 : i32
    scf.if %2 {
      %cst_19 = arith.constant 0.000000e+00 : f32
      %30 = vector.broadcast %cst_19 : f32 to vector<256x128xf32>
      %c0_20 = arith.constant 0 : index
      %c0_21 = arith.constant 0 : index
      %31 = vector.load %arg7[%c0_20, %c0_21] : memref<256x128xf32, #tpu.memory_space<vmem>>, vector<256x128xf32>
      tpu.vector_store %arg7[%c0_20, %c0_21], %30 {strides = array<i32>} : memref<256x128xf32, #tpu.memory_space<vmem>>, vector<256x128xf32>,
    } else {
    }
    %c0 = arith.constant 0 : index
    %c0_1 = arith.constant 0 : index
    %c0_2 = arith.constant 0 : index
    %3 = vector.load %arg2[%c0, %c0_1, %c0_2] : memref<1x4x128xf32, #tpu.memory_space<vmem>>, vector<1x4x128xf32>
    %4 = vector.shape_cast %3 : vector<1x4x128xf32> to vector<4x128xf32>
    %c0_3 = arith.constant 0 : index
    %c0_4 = arith.constant 0 : index
    %c0_5 = arith.constant 0 : index
    %5 = vector.load %arg3[%c0_3, %c0_4, %c0_5] : memref<1x4x128xf32, #tpu.memory_space<vmem>>, vector<1x4x128xf32>
    %6 = vector.shape_cast %5 : vector<1x4x128xf32> to vector<4x128xf32>
    %c0_6 = arith.constant 0 : index
    %c0_7 = arith.constant 0 : index
    %7 = vector.load %arg4[%c0_6, %c0_7] : memref<256x4xf32, #tpu.memory_space<vmem>>, vector<256x4xf32>
    %cst = arith.constant dense<0.000000e+00> : vector<256x128xf32>
    %8 = tpu.matmul %7, %4, %cst {dimension_numbers = #tpu.dot_dimension_numbers<[1], [0], [0], [1], [0, 0, 1, 1], [], []>} : vector<256x4xf32>, vector<4x128xf32>, vector<256x128xf32> -> vector<256x128xf32>
    %c0_8 = arith.constant 0 : index
    %c0_9 = arith.constant 0 : index
    %9 = vector.load %arg5[%c0_8, %c0_9] : memref<256x4xf32, #tpu.memory_space<vmem>>, vector<256x4xf32>
    %cst_10 = arith.constant dense<0.000000e+00> : vector<256x128xf32>
    %10 = tpu.matmul %9, %6, %cst_10 {dimension_numbers = #tpu.dot_dimension_numbers<[1], [0], [0], [1], [0, 0, 1, 1], [], []>} : vector<256x4xf32>, vector<4x128xf32>, vector<256x128xf32> -> vector<256x128xf32>
    %c0_11 = arith.constant 0 : index
    %c0_12 = arith.constant 0 : index
    %11 = vector.load %arg7[%c0_11, %c0_12] : memref<256x128xf32, #tpu.memory_space<vmem>>, vector<128x128xf32>
    %c128 = arith.constant 128 : index
    %c0_13 = arith.constant 0 : index
    %12 = vector.load %arg7[%c128, %c0_13] : memref<256x128xf32, #tpu.memory_space<vmem>>, vector<128x128xf32>
    %13 = vector.extract_strided_slice %8 {offsets = [0, 0], sizes = [128, 128], strides = [1, 1]} : vector<256x128xf32> to vector<128x128xf32>
    %14 = vector.extract_strided_slice %8 {offsets = [128, 0], sizes = [128, 128], strides = [1, 1]} : vector<256x128xf32> to vector<128x128xf32>
    %15 = vector.extract_strided_slice %10 {offsets = [0, 0], sizes = [128, 128], strides = [1, 1]} : vector<256x128xf32> to vector<128x128xf32>
    %16 = vector.extract_strided_slice %10 {offsets = [128, 0], sizes = [128, 128], strides = [1, 1]} : vector<256x128xf32> to vector<128x128xf32>
    %17 = arith.mulf %13, %15 : vector<128x128xf32>
    %18 = arith.addf %11, %17 : vector<128x128xf32>
    %19 = arith.mulf %14, %16 : vector<128x128xf32>
    %20 = arith.subf %18, %19 : vector<128x128xf32>
    %21 = arith.mulf %13, %16 : vector<128x128xf32>
    %22 = arith.addf %12, %21 : vector<128x128xf32>
    %23 = arith.mulf %14, %15 : vector<128x128xf32>
    %24 = arith.addf %22, %23 : vector<128x128xf32>
    %c0_14 = arith.constant 0 : index
    %c0_15 = arith.constant 0 : index
    %25 = vector.load %arg7[%c0_14, %c0_15] : memref<256x128xf32, #tpu.memory_space<vmem>>, vector<128x128xf32>
    tpu.vector_store %arg7[%c0_14, %c0_15], %20 {strides = array<i32>} : memref<256x128xf32, #tpu.memory_space<vmem>>, vector<128x128xf32>,
    %c128_16 = arith.constant 128 : index
    %c0_17 = arith.constant 0 : index
    %26 = vector.load %arg7[%c128_16, %c0_17] : memref<256x128xf32, #tpu.memory_space<vmem>>, vector<128x128xf32>
    tpu.vector_store %arg7[%c128_16, %c0_17], %24 {strides = array<i32>} : memref<256x128xf32, #tpu.memory_space<vmem>>, vector<128x128xf32>,
    %c1_i32 = arith.constant 1 : i32
    %27 = arith.cmpi eq, %arg1, %c1_i32 : i32
    %28 = arith.extui %27 : i1 to i32
    %c0_i32_18 = arith.constant 0 : i32
    %29 = arith.cmpi ne, %28, %c0_i32_18 : i32
    scf.if %29 {
      %cst_19 = arith.constant 1.000000e+00 : f32
      %30 = vector.broadcast %cst_19 : f32 to vector<1x128xf32>
      %c0_20 = arith.constant 0 : index
      %c0_21 = arith.constant 0 : index
      %31 = vector.load %arg7[%c0_20, %c0_21] : memref<256x128xf32, #tpu.memory_space<vmem>>, vector<256x128xf32>
      %cst_22 = arith.constant dense<0.000000e+00> : vector<1x256xf32>
      %32 = tpu.matmul %30, %31, %cst_22 {dimension_numbers = #tpu.dot_dimension_numbers<[1], [1], [0], [0], [0, 0, 1, 0], [], []>} : vector<1x128xf32>, vector<256x128xf32>, vector<1x256xf32> -> vector<1x256xf32>
      %c0_23 = arith.constant 0 : index
      %c0_24 = arith.constant 0 : index
      %c0_25 = arith.constant 0 : index
      %33 = vector.load %arg6[%c0_23, %c0_24, %c0_25] : memref<1x1x256xf32, #tpu.memory_space<vmem>>, vector<1x1x256xf32>
      %34 = vector.shape_cast %33 : vector<1x1x256xf32> to vector<1x256xf32>
      %35 = vector.shape_cast %32 : vector<1x256xf32> to vector<1x1x256xf32>
      tpu.vector_store %arg6[%c0_23, %c0_24, %c0_25], %35 {strides = array<i32>} : memref<1x1x256xf32, #tpu.memory_space<vmem>>, vector<1x1x256xf32>,
    } else {
    }
    return
  }
  func.func @transform_0(%arg0: i32, %arg1: i32) -> (i32, i32, i32) {
    %c0_i32 = arith.constant 0 : i32
    %c0_i32_0 = arith.constant 0 : i32
    return %arg0, %c0_i32, %arg1 : i32, i32, i32
  }
  func.func @transform_1(%arg0: i32, %arg1: i32) -> (i32, i32, i32) {
    %c0_i32 = arith.constant 0 : i32
    %c0_i32_0 = arith.constant 0 : i32
    return %arg0, %c0_i32, %arg1 : i32, i32, i32
  }
  func.func @transform_2(%arg0: i32, %arg1: i32) -> (i32, i32) {
    %c0_i32 = arith.constant 0 : i32
    %c0_i32_0 = arith.constant 0 : i32
    %c0_i32_1 = arith.constant 0 : i32
    return %c0_i32, %c0_i32_0 : i32, i32
  }
  func.func @transform_3(%arg0: i32, %arg1: i32) -> (i32, i32) {
    %c0_i32 = arith.constant 0 : i32
    %c0_i32_0 = arith.constant 0 : i32
    %c0_i32_1 = arith.constant 0 : i32
    return %c0_i32, %c0_i32_0 : i32, i32
  }
  func.func @transform_4(%arg0: i32, %arg1: i32) -> (i32, i32, i32) {
    %c0_i32 = arith.constant 0 : i32
    %c0_i32_0 = arith.constant 0 : i32
    %c0_i32_1 = arith.constant 0 : i32
    return %arg0, %c0_i32, %c0_i32_0 : i32, i32, i32
  }
}

</mosaic_0001>

<bundles_post_ra>
// kernel: tpu_custom_call.1
= control target key start
LH: loop header
LB: loop body
LE: loop exit
PB: predicated region body
PF: predicated region fallthrough
CT: control target
= control target key end

     0   :  { %9 = vsyncpa [#allocation4], 0  ;;  %s2429_s0 = inlined_call_operand.vmem [shape: f32[2,4,256], index: 0, kind: input, shape index: {}]   ;;  %s2430_s1 = inlined_call_operand.vmem [shape: f32[2,4,256], index: 1, kind: input, shape index: {}]   ;;  %s2431_s2 = inlined_call_operand.vmem [shape: f32[256,4], index: 2, kind: input, shape index: {}]   ;;  %s2432_s3 = inlined_call_operand.vmem [shape: f32[256,4], index: 3, kind: input, shape index: {}]   ;;  %s2433_s4 = inlined_call_operand.hbm [shape: f32[2,1,256], index: 4, kind: output, shape index: {}]  }
   0x1   :  { %11 = vsyncpa [#allocation4 + $0x1], 0  ;;  %s1914_s15 = smov 0   ;;  %s1916_s16 = smov 0  }
   0x2   :  { %s1918_s17 = smov 0   ;;  %s1920_s18 = smov 0  }
   0x3   :  { %s1922_s19 = smov 0   ;;  %s1924_s20 = smov 0  }
   0x4   :  { %s1926_s21 = smov 0   ;;  %s1928_s22 = smov 0  }
   0x5 LB: > { %s1433_s23 = sadd.s32 4294967295, %s1883_s22   ;;  %s1434_s24 = sadd.s32 4294967294, %s1883_s22   ;;  %s1883_s22 = sphi %s1928_s22, %s17_s22   ;;  %s1879_s21 = sphi %s1926_s21, %s2445_s21   ;;  %s1875_s20 = sphi %s1924_s20, %s2444_s20   ;;  %s1871_s19 = sphi %s1922_s19, %s2443_s19   ;;  %s1867_s18 = sphi %s1920_s18, %s2442_s18   ;;  %s1863_s17 = sphi %s1918_s17, %s2441_s17   ;;  %s1859_s16 = sphi %s1916_s16, %s2440_s16   ;;  %s1855_s15 = sphi %s1914_s15, %s2439_s15  }
   0x6   : > { %s26_s25 = sadd.s32 1, %s1875_s20  ;;  %s29_s26 = sadd.s32 1, %s1879_s21 }
   0x7   : > { %p27_p0 = scmp.ge.s32.totalorder %s26_s25, 2  ;;  %p144_p1 = scmp.ne.s32.totalorder %s1863_s17, %s1859_s16 }
   0x8   : > { %p145_p2 = scmp.eq.s32.totalorder %s1433_s23, 3  ;;  %p150_p4 = scmp.ne.s32.totalorder %s1859_s16, %s1855_s15 }
   0x9   : > { %s2447_s25 = smov (%p27_p0, %s26_s25), 0  ;;  %s2449_s26 = smov (!%p27_p0, %s29_s26), %s1879_s21 }
   0xa   : > { %p1963_p3 = por %p145_p2, %p144_p1  ;;  %p31_p5 = scmp.ge.s32.totalorder %s2449_s26, 2 }
   0xb   : > { %p151_p6 = scmp.eq.s32.totalorder %s1434_s24, 3  ;;  %p1437_p7 = scmp.ge.s32.totalorder %s1883_s22, 1 }
   0xc   : > { %p197_p8 = scmp.lt.s32.totalorder %s1883_s22, 5  ;;  %s2451_s26 = smov (%p31_p5, %s2449_s26), 0 }
   0xd   : > { %2436 = sst [smem:[#allocation6_spill]] %s2451_s26  ;;  %p1973_p9 = por %p151_p6, %p150_p4 }
   0xe   : > { %p198_p10 = pnand %p1437_p7, %p197_p8  ;;  %s131_s29 = ssub.s32 %s1879_s21, %s2451_s26 }
   0xf   : > { %s134_s30 = sadd.s32 1, %s1863_s17  ;;  %p132_p11 = scmp.eq.s32.totalorder %s131_s29, 0 }
  0x10   : > { %201 = sbr.rel (%p198_p10) target bundleno = 607 (0x25f), region = 36  ;;  %s231_s6 = sand.u32 (!%p198_p10), 1, %s1859_s16  }
  0x11   : > { %s1981_s5 = scalar_select %p132_p11, %s1863_s17, %s134_s30  }
  0x12   : > { %p234_p12 = scmp.lt.s32.totalorder (!%p198_p10), %s1871_s19, 1  ;;  %s1987_s7 = sshll.u32 (!%p198_p10), %s231_s6, 1 }
  0x13   : > { %p236_p13 = scmp.lt.s32.totalorder (!%p198_p10), %s1867_s18, 1  ;;  %s233_s26 = scalar_lea.vmem (!%p198_p10), [#allocation3], %s1987_s7 }
  0x14   : > { %p1443_p0 = scmp.ne.s32.totalorder (!%p198_p10), %s1867_s18, 0 }
  0x15   : > { %s235_s8 = scalar_select %p234_p12, %s1871_s19, 1 }
  0x16   : > { %s237_s9 = scalar_select %p236_p13, %s1867_s18, 1 }
  0x17   : > { %s1439_s10 = sshll.u32 %s235_s8, 1  ;;  %253 = sbr.rel (%p1443_p0) target bundleno = 45 (0x2d), region = 40 }
  0x18   : > { %s239_s11 = sadd.s32 %s1439_s10, %s237_s9 }
  0x19   : > { %s1440_s12 = sshll.u32 %s239_s11, 2 }
  0x1a   : > { %s1995_s23 = scalar_lea.vmem %s2429_s0, %s1440_s12  ;;  %s2000_s30 = scalar_lea.vmem %s2430_s1, %s1440_s12 }
  0x1c   : > { %v1885_v0 = vmov 0.0  }
  0x1d   : > { %254 = vst [vmem:[#allocation2 + $0xb0] sm:$0xff] %v1885_v0  ;;  %255 = vst [vmem:[#allocation2] sm:$0xff] %v1885_v0 }
  0x1e   : > { %256 = vst [vmem:[#allocation2 + $0xd8] sm:$0xff] %v1885_v0  ;;  %257 = vst [vmem:[#allocation2 + $0x18] sm:$0xff] %v1885_v0 }
  0x1f   : > { %258 = vst [vmem:[#allocation2 + $0x50] sm:$0xff] %v1885_v0  ;;  %259 = vst [vmem:[#allocation2 + $0x68] sm:$0xff] %v1885_v0 }
  0x20   : > { %260 = vst [vmem:[#allocation2 + $0x30] sm:$0xff] %v1885_v0  ;;  %261 = vst [vmem:[#allocation2 + $0x48] sm:$0xff] %v1885_v0 }
  0x21   : > { %262 = vst [vmem:[#allocation2 + $0x80] sm:$0xff] %v1885_v0  ;;  %263 = vst [vmem:[#allocation2 + $0x88] sm:$0xff] %v1885_v0 }
  0x22   : > { %264 = vst [vmem:[#allocation2 + $0xe8] sm:$0xff] %v1885_v0  ;;  %265 = vst [vmem:[#allocation2 + $0xb8] sm:$0xff] %v1885_v0 }
  0x23   : > { %266 = vst [vmem:[#allocation2 + $0x60] sm:$0xff] %v1885_v0  ;;  %267 = vst [vmem:[#allocation2 + $0xf0] sm:$0xff] %v1885_v0 }
  0x24   : > { %268 = vst [vmem:[#allocation2 + $0x8] sm:$0xff] %v1885_v0  ;;  %269 = vst [vmem:[#allocation2 + $0x78] sm:$0xff] %v1885_v0 }
  0x25   : > { %270 = vst [vmem:[#allocation2 + $0x38] sm:$0xff] %v1885_v0  ;;  %271 = vst [vmem:[#allocation2 + $0x58] sm:$0xff] %v1885_v0 }
  0x26   : > { %272 = vst [vmem:[#allocation2 + $0x40] sm:$0xff] %v1885_v0  ;;  %273 = vst [vmem:[#allocation2 + $0xc8] sm:$0xff] %v1885_v0 }
  0x27   : > { %274 = vst [vmem:[#allocation2 + $0xe0] sm:$0xff] %v1885_v0  ;;  %275 = vst [vmem:[#allocation2 + $0x90] sm:$0xff] %v1885_v0 }
  0x28   : > { %276 = vst [vmem:[#allocation2 + $0x70] sm:$0xff] %v1885_v0  ;;  %277 = vst [vmem:[#allocation2 + $0xc0] sm:$0xff] %v1885_v0 }
  0x29   : > { %278 = vst [vmem:[#allocation2 + $0xa8] sm:$0xff] %v1885_v0  ;;  %279 = vst [vmem:[#allocation2 + $0xd0] sm:$0xff] %v1885_v0 }
  0x2a   : > { %280 = vst [vmem:[#allocation2 + $0x10] sm:$0xff] %v1885_v0  ;;  %281 = vst [vmem:[#allocation2 + $0x28] sm:$0xff] %v1885_v0 }
  0x2b   : > { %282 = vst [vmem:[#allocation2 + $0xa0] sm:$0xff] %v1885_v0  ;;  %283 = vst [vmem:[#allocation2 + $0xf8] sm:$0xff] %v1885_v0 }
  0x2c   : > { %284 = vst [vmem:[#allocation2 + $0x20] sm:$0xff] %v1885_v0  ;;  %285 = vst [vmem:[#allocation2 + $0x98] sm:$0xff] %v1885_v0 }
  0x2d PF: > { %v286_v1 = vld [vmem:[%s1995_s23] sm:$0xf]  ;;  %vm417_vm0 = vcmask 1043456   ;;  %vm320_vm1 = vcmask 31744   ;;  %v289_v5 = vld [vmem:[%s2431_s2 + $0x8] sm:$0xff]  ;;  %v290_v7 = vld [vmem:[%s2431_s2 + $0x10] sm:$0xff] }
  0x2e   : > { %v287_v2 = vld [vmem:[%s2000_s30] sm:$0xf]  ;;  %1617 = vmatprep.subr.msk.mxu0 %vm417_vm0, %v286_v1  ;;  %v647_v6 = vld [vmem:[%s2432_s3 + $0x8] sm:$0xff]  ;;  %v648_v8 = vld [vmem:[%s2432_s3 + $0x10] sm:$0xff]  ;;  %p1510_p1 = scmp.ne.s32.totalorder %s1867_s18, 1 }
  0x2f   : > { %v288_v3 = vld [vmem:[%s2431_s2] sm:$0xff]  ;;  %1667 = vmatprep.subr.msk.mxu1 %vm417_vm0, %v287_v2  ;;  %1618 = vmatpush3.msk.msra.mxu0 %vm417_vm0, %v286_v1  ;;  %v291_v9 = vld [vmem:[%s2431_s2 + $0x18] sm:$0xff]  ;;  %v293_v13 = vld [vmem:[%s2431_s2 + $0x28] sm:$0xff] }
  0x30   : > { %v646_v4 = vld [vmem:[%s2432_s3] sm:$0xff]  ;;  %1619 = vmatprep.mubr.msk.f32.mxu0 %vm320_vm1, %v288_v3  ;;  %1668 = vmatpush3.msk.msra.mxu1 %vm417_vm0, %v287_v2  ;;  %v649_v10 = vld [vmem:[%s2432_s3 + $0x18] sm:$0xff]  ;;  %v651_v14 = vld [vmem:[%s2432_s3 + $0x28] sm:$0xff] }
  0x31   : > { %1669 = vmatprep.mubr.msk.f32.mxu1 %vm320_vm1, %v646_v4  ;;  %1620 = vmatmul.mubr.msk.f32.vlgmr.msra.gmra.mxu0 %vm320_vm1, %v289_v5  ;;  %v292_v11 = vld [vmem:[%s2431_s2 + $0x20] sm:$0xff]  ;;  %v294_v15 = vld [vmem:[%s2431_s2 + $0x30] sm:$0xff]  ;;  %v295_v17 = vld [vmem:[%s2431_s2 + $0x38] sm:$0xff] }
  0x32   : > { %1670 = vmatmul.mubr.msk.f32.vlgmr.msra.gmra.mxu1 %vm320_vm1, %v647_v6  ;;  %1622 = vmatprep.mubr.msk.f32.mxu0 %vm320_vm1, %v290_v7  ;;  %v650_v12 = vld [vmem:[%s2432_s3 + $0x20] sm:$0xff]  ;;  %v652_v16 = vld [vmem:[%s2432_s3 + $0x30] sm:$0xff]  ;;  %v653_v18 = vld [vmem:[%s2432_s3 + $0x38] sm:$0xff] }
  0x33   : > { %1672 = vmatprep.mubr.msk.f32.mxu1 %vm320_vm1, %v648_v8  ;;  %v296_v19 = vld [vmem:[%s2431_s2 + $0x40] sm:$0xff]  ;;  %v297_v21 = vld [vmem:[%s2431_s2 + $0x48] sm:$0xff]  ;;  %v298_v23 = vld [vmem:[%s2431_s2 + $0x50] sm:$0xff] }
  0x34   : > { %v654_v20 = vld [vmem:[%s2432_s3 + $0x40] sm:$0xff]  ;;  %v655_v22 = vld [vmem:[%s2432_s3 + $0x48] sm:$0xff]  ;;  %v656_v24 = vld [vmem:[%s2432_s3 + $0x50] sm:$0xff] }
  0x35   : > { %1623 = vmatmul.mubr.msk.f32.gmra.mxu0 %vm320_vm1, %v291_v9  ;;  %v299_v25 = vld [vmem:[%s2431_s2 + $0x58] sm:$0xff]  ;;  %v300_v27 = vld [vmem:[%s2431_s2 + $0x60] sm:$0xff]  ;;  %v301_v29 = vld [vmem:[%s2431_s2 + $0x68] sm:$0xff] }
  0x36   : > { %1673 = vmatmul.mubr.msk.f32.gmra.mxu1 %vm320_vm1, %v649_v10  ;;  %1625 = vmatprep.mubr.msk.f32.mxu0 %vm320_vm1, %v292_v11  ;;  %v657_v26 = vld [vmem:[%s2432_s3 + $0x58] sm:$0xff]  ;;  %v658_v28 = vld [vmem:[%s2432_s3 + $0x60] sm:$0xff]  ;;  %v659_v30 = vld [vmem:[%s2432_s3 + $0x68] sm:$0xff] }
  0x37   : > { %1675 = vmatprep.mubr.msk.f32.mxu1 %vm320_vm1, %v650_v12  ;;  %v302_v31 = vld [vmem:[%s2431_s2 + $0x70] sm:$0xff]  ;;  %v303_v33 = vld [vmem:[%s2431_s2 + $0x78] sm:$0xff]  ;;  %v304_v35 = vld [vmem:[%s2431_s2 + $0x80] sm:$0xff] }
  0x38   : > { %v660_v32 = vld [vmem:[%s2432_s3 + $0x70] sm:$0xff]  ;;  %v661_v34 = vld [vmem:[%s2432_s3 + $0x78] sm:$0xff]  ;;  %v662_v36 = vld [vmem:[%s2432_s3 + $0x80] sm:$0xff] }
  0x39   : > { %1626 = vmatmul.mubr.msk.f32.gmra.mxu0 %vm320_vm1, %v293_v13  ;;  %v305_v37 = vld [vmem:[%s2431_s2 + $0x88] sm:$0xff]  ;;  %v306_v39 = vld [vmem:[%s2431_s2 + $0x90] sm:$0xff]  ;;  %v307_v41 = vld [vmem:[%s2431_s2 + $0x98] sm:$0xff] }
  0x3a   : > { %1676 = vmatmul.mubr.msk.f32.gmra.mxu1 %vm320_vm1, %v651_v14  ;;  %1628 = vmatprep.mubr.msk.f32.mxu0 %vm320_vm1, %v294_v15  ;;  %v663_v38 = vld [vmem:[%s2432_s3 + $0x88] sm:$0xff]  ;;  %v664_v40 = vld [vmem:[%s2432_s3 + $0x90] sm:$0xff]  ;;  %v665_v42 = vld [vmem:[%s2432_s3 + $0x98] sm:$0xff] }
  0x3b   : > { %1678 = vmatprep.mubr.msk.f32.mxu1 %vm320_vm1, %v652_v16  ;;  %v308_v43 = vld [vmem:[%s2431_s2 + $0xa0] sm:$0xff]  ;;  %v309_v45 = vld [vmem:[%s2431_s2 + $0xa8] sm:$0xff]  ;;  %v310_v47 = vld [vmem:[%s2431_s2 + $0xb0] sm:$0xff] }
  0x3c   : > { %v666_v44 = vld [vmem:[%s2432_s3 + $0xa0] sm:$0xff]  ;;  %v667_v46 = vld [vmem:[%s2432_s3 + $0xa8] sm:$0xff]  ;;  %v668_v48 = vld [vmem:[%s2432_s3 + $0xb0] sm:$0xff] }
  0x3d   : > { %1629 = vmatmul.mubr.msk.f32.gmra.mxu0 %vm320_vm1, %v295_v17  ;;  %v311_v49 = vld [vmem:[%s2431_s2 + $0xb8] sm:$0xff]  ;;  %v312_v51 = vld [vmem:[%s2431_s2 + $0xc0] sm:$0xff]  ;;  %v313_v53 = vld [vmem:[%s2431_s2 + $0xc8] sm:$0xff] }
  0x3e   : > { %1679 = vmatmul.mubr.msk.f32.gmra.mxu1 %vm320_vm1, %v653_v18  ;;  %1631 = vmatprep.mubr.msk.f32.mxu0 %vm320_vm1, %v296_v19  ;;  %v669_v50 = vld [vmem:[%s2432_s3 + $0xb8] sm:$0xff]  ;;  %v670_v52 = vld [vmem:[%s2432_s3 + $0xc0] sm:$0xff]  ;;  %v671_v54 = vld [vmem:[%s2432_s3 + $0xc8] sm:$0xff] }
  0x3f   : > { %1681 = vmatprep.mubr.msk.f32.mxu1 %vm320_vm1, %v654_v20  ;;  %v314_v55 = vld [vmem:[%s2431_s2 + $0xd0] sm:$0xff]  ;;  %v315_v57 = vld [vmem:[%s2431_s2 + $0xd8] sm:$0xff]  ;;  %v316_v59 = vld [vmem:[%s2431_s2 + $0xe0] sm:$0xff] }
  0x40   : > { %v672_v56 = vld [vmem:[%s2432_s3 + $0xd0] sm:$0xff]  ;;  %v673_v58 = vld [vmem:[%s2432_s3 + $0xd8] sm:$0xff]  ;;  %v674_v60 = vld [vmem:[%s2432_s3 + $0xe0] sm:$0xff] }
  0x41   : > { %1632 = vmatmul.mubr.msk.f32.gmra.mxu0 %vm320_vm1, %v297_v21  ;;  %v317_v61 = vld [vmem:[%s2431_s2 + $0xe8] sm:$0xff]  ;;  %v318_v63 = vld [vmem:[%s2431_s2 + $0xf0] sm:$0xff]  ;;  %v319_v1 = vld [vmem:[%s2431_s2 + $0xf8] sm:$0xff] }
  0x42   : > { %1682 = vmatmul.mubr.msk.f32.gmra.mxu1 %vm320_vm1, %v655_v22  ;;  %1634 = vmatprep.mubr.msk.f32.mxu0 %vm320_vm1, %v298_v23  ;;  %v675_v62 = vld [vmem:[%s2432_s3 + $0xe8] sm:$0xff]  ;;  %v676_v0 = vld [vmem:[%s2432_s3 + $0xf0] sm:$0xff]  ;;  %v677_v2 = vld [vmem:[%s2432_s3 + $0xf8] sm:$0xff] }
  0x43   : > { %1684 = vmatprep.mubr.msk.f32.mxu1 %vm320_vm1, %v656_v24 }
  0x45   : > { %1635 = vmatmul.mubr.msk.f32.gmra.mxu0 %vm320_vm1, %v299_v25 }
  0x46   : > { %1685 = vmatmul.mubr.msk.f32.gmra.mxu1 %vm320_vm1, %v657_v26  ;;  %1637 = vmatprep.mubr.msk.f32.mxu0 %vm320_vm1, %v300_v27 }
  0x47   : > { %1687 = vmatprep.mubr.msk.f32.mxu1 %vm320_vm1, %v658_v28 }
  0x49   : > { %1638 = vmatmul.mubr.msk.f32.gmra.mxu0 %vm320_vm1, %v301_v29 }
  0x4a   : > { %1688 = vmatmul.mubr.msk.f32.gmra.mxu1 %vm320_vm1, %v659_v30  ;;  %1640 = vmatprep.mubr.msk.f32.mxu0 %vm320_vm1, %v302_v31 }
  0x4b   : > { %1690 = vmatprep.mubr.msk.f32.mxu1 %vm320_vm1, %v660_v32 }
  0x4d   : > { %1641 = vmatmul.mubr.msk.f32.gmra.mxu0 %vm320_vm1, %v303_v33 }
  0x4e   : > { %1691 = vmatmul.mubr.msk.f32.gmra.mxu1 %vm320_vm1, %v661_v34  ;;  %1643 = vmatprep.mubr.msk.f32.mxu0 %vm320_vm1, %v304_v35  ;;  %v1003_v34 = vld [vmem:[#allocation2] sm:$0xff] }
  0x4f   : > { %1693 = vmatprep.mubr.msk.f32.mxu1 %vm320_vm1, %v662_v36 }
  0x51   : > { %1644 = vmatmul.mubr.msk.f32.gmra.mxu0 %vm320_vm1, %v305_v37 }
  0x52   : > { %1694 = vmatmul.mubr.msk.f32.gmra.mxu1 %vm320_vm1, %v663_v38  ;;  %1646 = vmatprep.mubr.msk.f32.mxu0 %vm320_vm1, %v306_v39  ;;  %v1002_v38 = vld [vmem:[#allocation2 + $0xb0] sm:$0xff] }
  0x53   : > { %1696 = vmatprep.mubr.msk.f32.mxu1 %vm320_vm1, %v664_v40 }
  0x55   : > { %1647 = vmatmul.mubr.msk.f32.gmra.mxu0 %vm320_vm1, %v307_v41 }
  0x56   : > { %1697 = vmatmul.mubr.msk.f32.gmra.mxu1 %vm320_vm1, %v665_v42  ;;  %1649 = vmatprep.mubr.msk.f32.mxu0 %vm320_vm1, %v308_v43  ;;  %v1019_v42 = vld [vmem:[#allocation2 + $0x58] sm:$0xff] }
  0x57   : > { %1699 = vmatprep.mubr.msk.f32.mxu1 %vm320_vm1, %v666_v44  ;;  %v1005_v44 = vld [vmem:[#allocation2 + $0x18] sm:$0xff] }
  0x59   : > { %1650 = vmatmul.mubr.msk.f32.gmra.mxu0 %vm320_vm1, %v309_v45 }
  0x5a   : > { %1700 = vmatmul.mubr.msk.f32.gmra.mxu1 %vm320_vm1, %v667_v46  ;;  %1652 = vmatprep.mubr.msk.f32.mxu0 %vm320_vm1, %v310_v47 }
  0x5b   : > { %1702 = vmatprep.mubr.msk.f32.mxu1 %vm320_vm1, %v668_v48 }
  0x5d   : > { %1653 = vmatmul.mubr.msk.f32.gmra.mxu0 %vm320_vm1, %v311_v49  ;;  %v1004_v49 = vld [vmem:[#allocation2 + $0xd8] sm:$0xff] }
  0x5e   : > { %1703 = vmatmul.mubr.msk.f32.gmra.mxu1 %vm320_vm1, %v669_v50  ;;  %1655 = vmatprep.mubr.msk.f32.mxu0 %vm320_vm1, %v312_v51 }
  0x5f   : > { %1705 = vmatprep.mubr.msk.f32.mxu1 %vm320_vm1, %v670_v52 }
  0x61   : > { %1656 = vmatmul.mubr.msk.f32.gmra.mxu0 %vm320_vm1, %v313_v53 }
  0x62   : > { %1706 = vmatmul.mubr.msk.f32.gmra.mxu1 %vm320_vm1, %v671_v54  ;;  %1658 = vmatprep.mubr.msk.f32.mxu0 %vm320_vm1, %v314_v55 }
  0x63   : > { %1708 = vmatprep.mubr.msk.f32.mxu1 %vm320_vm1, %v672_v56  ;;  %v1018_v56 = vld [vmem:[#allocation2 + $0x38] sm:$0xff] }
  0x65   : > { %1659 = vmatmul.mubr.msk.f32.gmra.mxu0 %vm320_vm1, %v315_v57 }
  0x66   : > { %1709 = vmatmul.mubr.msk.f32.gmra.mxu1 %vm320_vm1, %v673_v58  ;;  %1661 = vmatprep.mubr.msk.f32.mxu0 %vm320_vm1, %v316_v59  ;;  %v1007_v59 = vld [vmem:[#allocation2 + $0x68] sm:$0xff] }
  0x67   : > { %1711 = vmatprep.mubr.msk.f32.mxu1 %vm320_vm1, %v674_v60 }
  0x69   : > { %1662 = vmatmul.mubr.msk.f32.gmra.mxu0 %vm320_vm1, %v317_v61 }
  0x6a   : > { %1712 = vmatmul.mubr.msk.f32.gmra.mxu1 %vm320_vm1, %v675_v62  ;;  %1664 = vmatprep.mubr.msk.f32.mxu0 %vm320_vm1, %v318_v63 }
  0x6b   : > { %1714 = vmatprep.mubr.msk.f32.mxu1 %vm320_vm1, %v676_v0 }
  0x6d   : > { %1665 = vmatmul.mubr.msk.f32.gmra.mxu0 %vm320_vm1, %v319_v1  ;;  %v1006_v1 = vld [vmem:[#allocation2 + $0x50] sm:$0xff] }
  0x6e   : > { %1715 = vmatmul.mubr.msk.f32.gmra.mxu1 %vm320_vm1, %v677_v2 }
  0xf1   : > { %v1621_v3 = vpop.f32.mrf.mxu0 }
  0xf2   : > { %v1671_v4 = vpop.f32.mrf.mxu1 }
  0xf3   : > { %v487_v5 = vpop.f32.mrf.mxu0  ;;  %v1035_v33 = vmul.f32 %v1671_v4, %v1621_v3 }
  0xf4   : > { %v2262_v6 = vpop.f32.mrf.mxu1 }
  0xf5   : > { %v2264_v7 = vpop.f32.mrf.mxu0  ;;  %v1034_v35 = vmul.f32 %v2262_v6, %v487_v5  ;;  %v1051_v43 = vadd.f32 %v1035_v33, %v1003_v34  ;;  %v1021_v33 = vld [vmem:[#allocation2 + $0xc8] sm:$0xff] }
  0xf6   : > { %v2266_v8 = vpop.f32.mrf.mxu1 }
  0xf7   : > { %v2268_v9 = vpop.f32.mrf.mxu0  ;;  %v1037_v39 = vmul.f32 %v2266_v8, %v2264_v7  ;;  %v1050_v48 = vadd.f32 %v1034_v35, %v1002_v38 }
  0xf8   : > { %v2270_v10 = vpop.f32.mrf.mxu1 }
  0xf9   : > { %v2272_v11 = vpop.f32.mrf.mxu0  ;;  %v1036_v45 = vmul.f32 %v2270_v10, %v2268_v9  ;;  %v1053_v58 = vadd.f32 %v1037_v39, %v1005_v44 }
  0xfa   : > { %v2274_v12 = vpop.f32.mrf.mxu1 }
  0xfb   : > { %v2276_v13 = vpop.f32.mrf.mxu0  ;;  %v1039_v50 = vmul.f32 %v2274_v12, %v2272_v11  ;;  %v1052_v0 = vadd.f32 %v1036_v45, %v1004_v49 }
  0xfc   : > { %v2278_v14 = vpop.f32.mrf.mxu1 }
  0xfd   : > { %v2280_v15 = vpop.f32.mrf.mxu0  ;;  %v1038_v60 = vmul.f32 %v2278_v14, %v2276_v13 }
  0xfe   : > { %v2282_v16 = vpop.f32.mrf.mxu1 }
  0xff   : > { %v2284_v17 = vpop.f32.mrf.mxu0 }
 0x100   : > { %v2286_v18 = vpop.f32.mrf.mxu1 }
 0x101   : > { %v2288_v19 = vpop.f32.mrf.mxu0 }
 0x102   : > { %v2290_v20 = vpop.f32.mrf.mxu1 }
 0x103   : > { %v2292_v21 = vpop.f32.mrf.mxu0 }
 0x104   : > { %v2294_v22 = vpop.f32.mrf.mxu1 }
 0x105   : > { %v2296_v23 = vpop.f32.mrf.mxu0 }
 0x106   : > { %v2298_v24 = vpop.f32.mrf.mxu1 }
 0x107   : > { %v2300_v25 = vpop.f32.mrf.mxu0 }
 0x108   : > { %v2302_v26 = vpop.f32.mrf.mxu1 }
 0x109   : > { %v2304_v27 = vpop.f32.mrf.mxu0 }
 0x10a   : > { %v2306_v28 = vpop.f32.mrf.mxu1 }
 0x10b   : > { %v2308_v29 = vpop.f32.mrf.mxu0 }
 0x10c   : > { %v2310_v30 = vpop.f32.mrf.mxu1 }
 0x10d   : > { %v2312_v31 = vpop.f32.mrf.mxu0 }
 0x10e   : > { %v2314_v32 = vpop.f32.mrf.mxu1 }
 0x10f   : > { %v2317_v36 = vpop.f32.mrf.mxu0 }
 0x110   : > { %v2319_v37 = vpop.f32.mrf.mxu1 }
 0x111   : > { %v1645_v40 = vpop.f32.mrf.mxu0 }
 0x112   : > { %v1695_v41 = vpop.f32.mrf.mxu1  ;;  %v1131_v53 = vmul.f32 %v1671_v4, %v1645_v40  ;;  %v1041_v4 = vmul.f32 %v2282_v16, %v2280_v15 }
 0x113   : > { %v1067_v46 = vmul.f32 %v1695_v41, %v1645_v40  ;;  %v1099_v47 = vmul.f32 %v1695_v41, %v1621_v3  ;;  %v567_v51 = vpop.f32.mrf.mxu0 }
 0x114   : > { %v923_v52 = vpop.f32.mrf.mxu1  ;;  %v1130_v35 = vmul.f32 %v2262_v6, %v567_v51 }
 0x115   : > { %v1083_v54 = vsub.f32 %v1051_v43, %v1067_v46  ;;  %v1115_v55 = vadd.f32 %v1099_v47, %v1019_v42  ;;  %v1066_v57 = vmul.f32 %v923_v52, %v567_v51  ;;  %v1098_v61 = vmul.f32 %v923_v52, %v487_v5  ;;  %v1648_v62 = vpop.f32.mrf.mxu0  ;;  %v1020_v5 = vld [vmem:[#allocation2 + $0x40] sm:$0xff]  ;;  %v1009_v43 = vld [vmem:[#allocation2 + $0x48] sm:$0xff] }
 0x116   : > { %v1698_v63 = vpop.f32.mrf.mxu1  ;;  %v1055_v42 = vadd.f32 %v1039_v50, %v1007_v59  ;;  %v1054_v47 = vadd.f32 %v1038_v60, %v1006_v1  ;;  %v1133_v49 = vmul.f32 %v2266_v8, %v1648_v62  ;;  %v1023_v50 = vld [vmem:[#allocation2 + $0x90] sm:$0xff]  ;;  %v1042_v1 = vmul.f32 %v2294_v22, %v2292_v21 }
 0x117   : > { %v1147_v2 = vadd.f32 %v1131_v53, %v1115_v55  ;;  %1163 = vst [vmem:[#allocation2] sm:$0xff] %v1083_v54  ;;  %v1082_v3 = vsub.f32 %v1050_v48, %v1066_v57  ;;  %v1069_v34 = vmul.f32 %v1698_v63, %v1648_v62  ;;  %v1114_v38 = vadd.f32 %v1098_v61, %v1018_v56  ;;  %v577_v40 = vpop.f32.mrf.mxu0  ;;  %v1008_v60 = vld [vmem:[#allocation2 + $0x30] sm:$0xff] }
 0x118   : > { %v1101_v39 = vmul.f32 %v1698_v63, %v2264_v7  ;;  %v933_v41 = vpop.f32.mrf.mxu1  ;;  %v1132_v7 = vmul.f32 %v2270_v10, %v577_v40  ;;  %v1057_v56 = vadd.f32 %v1041_v4, %v1009_v43  ;;  %v1040_v57 = vmul.f32 %v2286_v18, %v2284_v17  ;;  %v1022_v63 = vld [vmem:[#allocation2 + $0xe0] sm:$0xff]  ;;  %v1013_v43 = vld [vmem:[#allocation2 + $0xb8] sm:$0xff] }
 0x119   : > { %1179 = vst [vmem:[#allocation2 + $0x58] sm:$0xff] %v1147_v2  ;;  %1162 = vst [vmem:[#allocation2 + $0xb0] sm:$0xff] %v1082_v3  ;;  %v1085_v44 = vsub.f32 %v1053_v58, %v1069_v34  ;;  %v1068_v45 = vmul.f32 %v933_v41, %v577_v40  ;;  %v1100_v46 = vmul.f32 %v933_v41, %v2268_v9  ;;  %v1651_v6 = vpop.f32.mrf.mxu0  ;;  %v1025_v4 = vld [vmem:[#allocation2 + $0xc0] sm:$0xff] }
 0x11a   : > { %v1146_v48 = vadd.f32 %v1130_v35, %v1114_v38  ;;  %v1117_v52 = vadd.f32 %v1101_v39, %v1021_v33  ;;  %v1701_v51 = vpop.f32.mrf.mxu1  ;;  %v1043_v61 = vmul.f32 %v2290_v20, %v2288_v19  ;;  %v1135_v2 = vmul.f32 %v2274_v12, %v1651_v6  ;;  %v1011_v35 = vld [vmem:[#allocation2 + $0x88] sm:$0xff]  ;;  %v1010_v38 = vld [vmem:[#allocation2 + $0x80] sm:$0xff] }
 0x11b   : > { %1165 = vst [vmem:[#allocation2 + $0x18] sm:$0xff] %v1085_v44  ;;  %v1084_v53 = vsub.f32 %v1052_v0, %v1068_v45  ;;  %v1116_v54 = vadd.f32 %v1100_v46, %v1020_v5  ;;  %v1071_v55 = vmul.f32 %v1701_v51, %v1651_v6  ;;  %v1103_v58 = vmul.f32 %v1701_v51, %v2272_v11  ;;  %v587_v59 = vpop.f32.mrf.mxu0  ;;  %v1024_v6 = vld [vmem:[#allocation2 + $0x70] sm:$0xff] }
 0x11c   : > { %1178 = vst [vmem:[#allocation2 + $0x38] sm:$0xff] %v1146_v48  ;;  %v1149_v9 = vadd.f32 %v1133_v49, %v1117_v52  ;;  %v943_v8 = vpop.f32.mrf.mxu1  ;;  %v1045_v39 = vmul.f32 %v2298_v24, %v2296_v23  ;;  %v1134_v44 = vmul.f32 %v2278_v14, %v587_v59 }
 0x11d   : > { %v1148_v62 = vadd.f32 %v1132_v7, %v1116_v54  ;;  %1164 = vst [vmem:[#allocation2 + $0xd8] sm:$0xff] %v1084_v53  ;;  %v1087_v10 = vsub.f32 %v1055_v42, %v1071_v55  ;;  %v1070_v0 = vmul.f32 %v943_v8, %v587_v59  ;;  %v1119_v3 = vadd.f32 %v1103_v58, %v1023_v50  ;;  %v1654_v33 = vpop.f32.mrf.mxu0 }
 0x11e   : > { %1181 = vst [vmem:[#allocation2 + $0xc8] sm:$0xff] %v1149_v9  ;;  %v1102_v11 = vmul.f32 %v943_v8, %v2276_v13  ;;  %v1704_v34 = vpop.f32.mrf.mxu1  ;;  %v1056_v42 = vadd.f32 %v1040_v57, %v1008_v60  ;;  %v1137_v48 = vmul.f32 %v2282_v16, %v1654_v33  ;;  %v1059_v7 = vadd.f32 %v1043_v61, %v1011_v35  ;;  %v1027_v9 = vld [vmem:[#allocation2 + $0xd0] sm:$0xff] }
 0x11f   : > { %1180 = vst [vmem:[#allocation2 + $0x40] sm:$0xff] %v1148_v62  ;;  %1167 = vst [vmem:[#allocation2 + $0x68] sm:$0xff] %v1087_v10  ;;  %v1086_v40 = vsub.f32 %v1054_v47, %v1070_v0  ;;  %v1073_v41 = vmul.f32 %v1704_v34, %v1654_v33  ;;  %v1105_v5 = vmul.f32 %v1704_v34, %v2280_v15  ;;  %v597_v45 = vpop.f32.mrf.mxu0  ;;  %v1012_v62 = vld [vmem:[#allocation2 + $0xe8] sm:$0xff] }
 0x120   : > { %v1151_v12 = vadd.f32 %v1135_v2, %v1119_v3  ;;  %v1118_v13 = vadd.f32 %v1102_v11, %v1022_v63  ;;  %v953_v46 = vpop.f32.mrf.mxu1  ;;  %v1058_v47 = vadd.f32 %v1042_v1, %v1010_v38  ;;  %v1061_v55 = vadd.f32 %v1045_v39, %v1013_v43  ;;  %v1015_v2 = vld [vmem:[#allocation2 + $0xf0] sm:$0xff] }
 0x121   : > { %1166 = vst [vmem:[#allocation2 + $0x50] sm:$0xff] %v1086_v40  ;;  %v1089_v49 = vsub.f32 %v1057_v56, %v1073_v41  ;;  %v1121_v52 = vadd.f32 %v1105_v5, %v1025_v4  ;;  %v1072_v51 = vmul.f32 %v953_v46, %v597_v45  ;;  %v1104_v15 = vmul.f32 %v953_v46, %v2284_v17  ;;  %v1657_v54 = vpop.f32.mrf.mxu0  ;;  %v1026_v17 = vld [vmem:[#allocation2 + $0xa8] sm:$0xff]  ;;  %v1014_v4 = vld [vmem:[#allocation2 + $0x60] sm:$0xff] }
 0x122   : > { %1183 = vst [vmem:[#allocation2 + $0x90] sm:$0xff] %v1151_v12  ;;  %v1150_v53 = vadd.f32 %v1134_v44, %v1118_v13  ;;  %v1707_v50 = vpop.f32.mrf.mxu1  ;;  %v1044_v16 = vmul.f32 %v2302_v26, %v2300_v25  ;;  %v1136_v56 = vmul.f32 %v2286_v18, %v597_v45  ;;  %v1047_v10 = vmul.f32 %v2306_v28, %v2304_v27  ;;  %v1029_v40 = vld [vmem:[#allocation2 + $0x28] sm:$0xff]  ;;  %v1028_v45 = vld [vmem:[#allocation2 + $0x10] sm:$0xff] }
 0x123   : > { %v1153_v14 = vadd.f32 %v1137_v48, %v1121_v52  ;;  %1169 = vst [vmem:[#allocation2 + $0x48] sm:$0xff] %v1089_v49  ;;  %v1088_v57 = vsub.f32 %v1056_v42, %v1072_v51  ;;  %v1075_v58 = vmul.f32 %v1707_v50, %v1657_v54  ;;  %v1120_v59 = vadd.f32 %v1104_v15, %v1024_v6  ;;  %v607_v60 = vpop.f32.mrf.mxu0 }
 0x124   : > { %1182 = vst [vmem:[#allocation2 + $0xe0] sm:$0xff] %v1150_v53  ;;  %v1107_v8 = vmul.f32 %v1707_v50, %v2288_v19  ;;  %v963_v61 = vpop.f32.mrf.mxu1  ;;  %v1046_v18 = vmul.f32 %v2310_v30, %v2308_v29  ;;  %v1139_v19 = vmul.f32 %v2290_v20, %v1657_v54  ;;  %v1138_v35 = vmul.f32 %v2294_v22, %v607_v60  ;;  %v1017_v54 = vld [vmem:[#allocation2 + $0x78] sm:$0xff] }
 0x125   : > { %1185 = vst [vmem:[#allocation2 + $0xc0] sm:$0xff] %v1153_v14  ;;  %1168 = vst [vmem:[#allocation2 + $0x30] sm:$0xff] %v1088_v57  ;;  %v1091_v63 = vsub.f32 %v1059_v7, %v1075_v58  ;;  %v1074_v0 = vmul.f32 %v963_v61, %v607_v60  ;;  %v1106_v1 = vmul.f32 %v963_v61, %v2292_v21  ;;  %v1660_v33 = vpop.f32.mrf.mxu0  ;;  %v1031_v7 = vld [vmem:[#allocation2 + $0xf8] sm:$0xff] }
 0x126   : > { %v1152_v3 = vadd.f32 %v1136_v56, %v1120_v59  ;;  %v1123_v11 = vadd.f32 %v1107_v8, %v1027_v9  ;;  %v1710_v34 = vpop.f32.mrf.mxu1  ;;  %v1060_v5 = vadd.f32 %v1044_v16, %v1012_v62  ;;  %v1063_v44 = vadd.f32 %v1047_v10, %v1015_v2  ;;  %v1030_v56 = vld [vmem:[#allocation2 + $0xa0] sm:$0xff]  ;;  %v1016_v8 = vld [vmem:[#allocation2 + $0x8] sm:$0xff] }
 0x127   : > { %1171 = vst [vmem:[#allocation2 + $0x88] sm:$0xff] %v1091_v63  ;;  %v1090_v38 = vsub.f32 %v1058_v47, %v1074_v0  ;;  %v1122_v39 = vadd.f32 %v1106_v1, %v1026_v17  ;;  %v1077_v41 = vmul.f32 %v1710_v34, %v1660_v33  ;;  %v1109_v42 = vmul.f32 %v1710_v34, %v2296_v23  ;;  %v617_v43 = vpop.f32.mrf.mxu0  ;;  %v1033_v63 = vld [vmem:[#allocation2 + $0x98] sm:$0xff] }
 0x128   : > { %1184 = vst [vmem:[#allocation2 + $0x70] sm:$0xff] %v1152_v3  ;;  %v1155_v21 = vadd.f32 %v1139_v19, %v1123_v11  ;;  %v973_v12 = vpop.f32.mrf.mxu1  ;;  %v1062_v48 = vadd.f32 %v1046_v18, %v1014_v4  ;;  %v1141_v22 = vmul.f32 %v2298_v24, %v1660_v33  ;;  %v1049_v23 = vmul.f32 %v2314_v32, %v2312_v31  ;;  %v1032_v19 = vld [vmem:[#allocation2 + $0x20] sm:$0xff] }
 0x129   : > { %v1154_v20 = vadd.f32 %v1138_v35, %v1122_v39  ;;  %1170 = vst [vmem:[#allocation2 + $0x80] sm:$0xff] %v1090_v38  ;;  %v1093_v13 = vsub.f32 %v1061_v55, %v1077_v41  ;;  %v1076_v46 = vmul.f32 %v973_v12, %v617_v43  ;;  %v1125_v49 = vadd.f32 %v1109_v42, %v1029_v40  ;;  %v1663_v6 = vpop.f32.mrf.mxu0 }
 0x12a   : > { %1187 = vst [vmem:[#allocation2 + $0xd0] sm:$0xff] %v1155_v21  ;;  %v1108_v52 = vmul.f32 %v973_v12, %v2300_v25  ;;  %v1713_v51 = vpop.f32.mrf.mxu1  ;;  %v1048_v50 = vmul.f32 %v2319_v37, %v2317_v36  ;;  %v1140_v55 = vmul.f32 %v2302_v26, %v617_v43  ;;  %v1143_v9 = vmul.f32 %v2306_v28, %v1663_v6 }
 0x12b   : > { %1186 = vst [vmem:[#allocation2 + $0xa8] sm:$0xff] %v1154_v20  ;;  %1173 = vst [vmem:[#allocation2 + $0xb8] sm:$0xff] %v1093_v13  ;;  %v1092_v47 = vsub.f32 %v1060_v5, %v1076_v46  ;;  %v1079_v53 = vmul.f32 %v1713_v51, %v1663_v6  ;;  %v1111_v15 = vmul.f32 %v1713_v51, %v2304_v27  ;;  %v627_v14 = vpop.f32.mrf.mxu0 }
 0x12c   : > { %v1157_v24 = vadd.f32 %v1141_v22, %v1125_v49  ;;  %v1124_v25 = vadd.f32 %v1108_v52, %v1028_v45  ;;  %v983_v57 = vpop.f32.mrf.mxu1  ;;  %v1065_v62 = vadd.f32 %v1049_v23, %v1017_v54  ;;  %v1142_v28 = vmul.f32 %v2310_v30, %v627_v14 }
 0x12d   : > { %1172 = vst [vmem:[#allocation2 + $0xe8] sm:$0xff] %v1092_v47  ;;  %v1095_v58 = vsub.f32 %v1063_v44, %v1079_v53  ;;  %v1127_v16 = vadd.f32 %v1111_v15, %v1031_v7  ;;  %v1078_v59 = vmul.f32 %v983_v57, %v627_v14  ;;  %v1110_v60 = vmul.f32 %v983_v57, %v2308_v29  ;;  %v1666_v61 = vpop.f32.mrf.mxu0 }
 0x12e   : > { %1189 = vst [vmem:[#allocation2 + $0x28] sm:$0xff] %v1157_v24  ;;  %v1156_v27 = vadd.f32 %v1140_v55, %v1124_v25  ;;  %v1716_v17 = vpop.f32.mrf.mxu1  ;;  %v1064_v11 = vadd.f32 %v1048_v50, %v1016_v8  ;;  %v1145_v35 = vmul.f32 %v2314_v32, %v1666_v61 }
 0x12f   : > { %v1159_v10 = vadd.f32 %v1143_v9, %v1127_v16  ;;  %1175 = vst [vmem:[#allocation2 + $0xf0] sm:$0xff] %v1095_v58  ;;  %v1094_v26 = vsub.f32 %v1062_v48, %v1078_v59  ;;  %v1081_v0 = vmul.f32 %v1716_v17, %v1666_v61  ;;  %v1126_v1 = vadd.f32 %v1110_v60, %v1030_v56  ;;  %v637_v18 = vpop.f32.mrf.mxu0 }
 0x130   : > { %1188 = vst [vmem:[#allocation2 + $0x10] sm:$0xff] %v1156_v27  ;;  %v1113_v2 = vmul.f32 %v1716_v17, %v2312_v31  ;;  %v993_v3 = vpop.f32.mrf.mxu1  ;;  %v1144_v30 = vmul.f32 %v2319_v37, %v637_v18 }
 0x131   : > { %1191 = vst [vmem:[#allocation2 + $0xf8] sm:$0xff] %v1159_v10  ;;  %1174 = vst [vmem:[#allocation2 + $0x60] sm:$0xff] %v1094_v26  ;;  %v1097_v29 = vsub.f32 %v1065_v62, %v1081_v0  ;;  %v1080_v33 = vmul.f32 %v993_v3, %v637_v18  ;;  %v1112_v34 = vmul.f32 %v993_v3, %v2317_v36 }
 0x132   : > { %v1158_v4 = vadd.f32 %v1142_v28, %v1126_v1  ;;  %v1129_v38 = vadd.f32 %v1113_v2, %v1033_v63 }
 0x133   : > { %1177 = vst [vmem:[#allocation2 + $0x78] sm:$0xff] %v1097_v29  ;;  %v1096_v39 = vsub.f32 %v1064_v11, %v1080_v33  ;;  %v1128_v40 = vadd.f32 %v1112_v34, %v1032_v19  ;;  %1197 = sbr.rel (%p1510_p1) target bundleno = 584 (0x248), region = 44 }
 0x134   : > { %1190 = vst [vmem:[#allocation2 + $0xa0] sm:$0xff] %v1158_v4  ;;  %v1161_v31 = vadd.f32 %v1145_v35, %v1129_v38 }
 0x135   : > { %v1160_v41 = vadd.f32 %v1144_v30, %v1128_v40  ;;  %1176 = vst [vmem:[#allocation2 + $0x8] sm:$0xff] %v1096_v39 }
 0x136   : > { %1193 = vst [vmem:[#allocation2 + $0x98] sm:$0xff] %v1161_v31 }
 0x137   : > { %1192 = vst [vmem:[#allocation2 + $0x20] sm:$0xff] %v1160_v41 }
 0x138   : > { %v1886_v32 = vmov 1.0   ;;  %v1227_v42 = vld [vmem:[#allocation2 + $0xf8] sm:$0xff]  ;;  %v1211_v43 = vld [vmem:[#allocation2 + $0xf0] sm:$0xff]  ;;  %v1210_v44 = vld [vmem:[#allocation2 + $0x60] sm:$0xff]  ;;  %v1887_v16 = vmov 1966171168   ;;  %v1307_v59 = vlaneseq }
 0x139   : > { %1615 = vmatprep.mubr.f32.mxu0 %v1886_v32  ;;  %v1225_v20 = vld [vmem:[#allocation2 + $0x28] sm:$0xff]  ;;  %v1209_v13 = vld [vmem:[#allocation2 + $0xb8] sm:$0xff]  ;;  %v1224_v45 = vld [vmem:[#allocation2 + $0x10] sm:$0xff]  ;;  %v1305_v56 = vunpack.c.l.s4 %v1887_v16 }
 0x13a   : > { %v1213_v36 = vld [vmem:[#allocation2 + $0x78] sm:$0xff]  ;;  %v1208_v46 = vld [vmem:[#allocation2 + $0xe8] sm:$0xff]  ;;  %v1223_v48 = vld [vmem:[#allocation2 + $0xd0] sm:$0xff]  ;;  %v1308_v27 = vshrl.u32 %v1307_v59, 7  ;;  %vm1321_vm2 = vcmp.lt.s32.totalorder %v1307_v59, 256 }
 0x13b   : > { %v1226_v12 = vld [vmem:[#allocation2 + $0xa0] sm:$0xff]  ;;  %v1207_v22 = vld [vmem:[#allocation2 + $0x88] sm:$0xff]  ;;  %v1220_v7 = vld [vmem:[#allocation2 + $0x70] sm:$0xff]  ;;  %v1306_v8 = vunpack.c.0.s8 %v1305_v56 }
 0x13c   : > { %v1212_v37 = vld [vmem:[#allocation2 + $0x8] sm:$0xff]  ;;  %v1206_v52 = vld [vmem:[#allocation2 + $0x80] sm:$0xff]  ;;  %v1204_v23 = vld [vmem:[#allocation2 + $0x30] sm:$0xff] }
 0x13d   : > { %v1229_v5 = vld [vmem:[#allocation2 + $0x98] sm:$0xff]  ;;  %v1222_v49 = vld [vmem:[#allocation2 + $0xa8] sm:$0xff]  ;;  %v1221_v6 = vld [vmem:[#allocation2 + $0xc0] sm:$0xff]  ;;  %v1309_v61 = vsub.s32 %v1306_v8, %v1308_v27 }
 0x13e   : > { %v1228_v21 = vld [vmem:[#allocation2 + $0x20] sm:$0xff]  ;;  %1583 = vmatprep.subr.mxu0 %v1229_v5  ;;  %v1205_v51 = vld [vmem:[#allocation2 + $0x48] sm:$0xff]  ;;  %v1219_v47 = vld [vmem:[#allocation2 + $0x90] sm:$0xff] }
 0x13f   : > { %1584 = vmatpush3.xpose.msra.mxu0 %v1213_v36  ;;  %v1203_v53 = vld [vmem:[#allocation2 + $0x68] sm:$0xff]  ;;  %v1218_v15 = vld [vmem:[#allocation2 + $0xe0] sm:$0xff]  ;;  %v1202_v54 = vld [vmem:[#allocation2 + $0x50] sm:$0xff] }
 0x140   : > { %1585 = vmatprep.subr.mxu0 %v1228_v21  ;;  %v1217_v50 = vld [vmem:[#allocation2 + $0xc8] sm:$0xff]  ;;  %v1201_v24 = vld [vmem:[#allocation2 + $0x18] sm:$0xff]  ;;  %v1216_v55 = vld [vmem:[#allocation2 + $0x40] sm:$0xff] }
 0x141   : > { %v1200_v25 = vld [vmem:[#allocation2 + $0xd8] sm:$0xff]  ;;  %v1199_v57 = vld [vmem:[#allocation2] sm:$0xff]  ;;  %v1198_v58 = vld [vmem:[#allocation2 + $0xb0] sm:$0xff] }
 0x142   : > { %v1215_v14 = vld [vmem:[#allocation2 + $0x58] sm:$0xff] }
 0x143   : > { %1586 = vmatpush3.xpose.msra.mxu0 %v1212_v37  ;;  %v1214_v9 = vld [vmem:[#allocation2 + $0x38] sm:$0xff] }
 0x144   : > { %1587 = vmatprep.subr.mxu0 %v1227_v42 }
 0x147   : > { %1588 = vmatpush3.xpose.msra.mxu0 %v1211_v43 }
 0x148   : > { %1589 = vmatprep.subr.mxu0 %v1226_v12 }
 0x14b   : > { %1590 = vmatpush3.xpose.msra.mxu0 %v1210_v44 }
 0x14c   : > { %1591 = vmatprep.subr.mxu0 %v1225_v20 }
 0x14f   : > { %1592 = vmatpush3.xpose.msra.mxu0 %v1209_v13 }
 0x150   : > { %1593 = vmatprep.subr.mxu0 %v1224_v45 }
 0x153   : > { %1594 = vmatpush3.xpose.msra.mxu0 %v1208_v46 }
 0x154   : > { %1595 = vmatprep.subr.mxu0 %v1223_v48 }
 0x157   : > { %1596 = vmatpush3.xpose.msra.mxu0 %v1207_v22 }
 0x158   : > { %1597 = vmatprep.subr.mxu0 %v1222_v49 }
 0x15b   : > { %1598 = vmatpush3.xpose.msra.mxu0 %v1206_v52 }
 0x15c   : > { %1599 = vmatprep.subr.mxu0 %v1221_v6 }
 0x15f   : > { %1600 = vmatpush3.xpose.msra.mxu0 %v1205_v51 }
 0x160   : > { %1601 = vmatprep.subr.mxu0 %v1220_v7 }
 0x163   : > { %1602 = vmatpush3.xpose.msra.mxu0 %v1204_v23 }
 0x164   : > { %1603 = vmatprep.subr.mxu0 %v1219_v47 }
 0x167   : > { %1604 = vmatpush3.xpose.msra.mxu0 %v1203_v53 }
 0x168   : > { %1605 = vmatprep.subr.mxu0 %v1218_v15 }
 0x16b   : > { %1606 = vmatpush3.xpose.msra.mxu0 %v1202_v54 }
 0x16c   : > { %1607 = vmatprep.subr.mxu0 %v1217_v50 }
 0x16f   : > { %1608 = vmatpush3.xpose.msra.mxu0 %v1201_v24 }
 0x170   : > { %1609 = vmatprep.subr.mxu0 %v1216_v55 }
 0x173   : > { %1610 = vmatpush3.xpose.msra.mxu0 %v1200_v25 }
 0x174   : > { %1611 = vmatprep.subr.mxu0 %v1215_v14 }
 0x177   : > { %1612 = vmatpush3.xpose.msra.mxu0 %v1199_v57 }
 0x178   : > { %1613 = vmatprep.subr.mxu0 %v1214_v9 }
 0x17b   : > { %1614 = vmatpush3.xpose.msra.mxu0 %v1198_v58 }
 0x17e   : > { %1616 = vmatmul.mubr.f32.vlgmr.msra.gmra.mxu0 %v1886_v32 }
 0x23e   : > { %v1296_v60 = vpop.f32.mrf.mxu0 }
 0x240   : > { %v1298_v17 = vpop.f32.mrf.mxu0 }
 0x241   : > { %v1303_v62 = vcombine.low %v1296_v60, %v1298_v17 }
 0x243   : > { %v1310_v10 = vrot.slane %v1303_v62, %v1309_v61 }
 0x245   : > { %v1317_v26 = vrot.slane %v1310_v10, %v1309_v61 }
 0x247   : > { %1323 = vst.msk [vmem:[%s233_s26] sm:$0x3] %vm1321_vm2, %v1317_v26 }
 0x248 PF: > { %s1516_s18 = sshll.u32 %s1871_s19, 5  ;;  %s1339_s30 = sshll.u32 %s233_s26, 4  ;;  %s1340_s30 = int_to_ptr.vmem [resolvable:$true] %s1339_s30 }
 0x249   : > { %s1337_s29 = scalar_lea.hbm %s2433_s4, %s1516_s18  ;;  %s1325_s8 = scalar_lea.sflag [#allocation4], %s231_s6 }
 0x24a   : > { %s1791_s9 = scalar_lea.vmem %s1340_s30, 32  ;;  %s1888_s10 = smov [#allocation3]  }
 0x24b   : > { %p1792_p2 = scmp.ne.s32.totalorder %s1340_s30, %s1791_s9  ;;  %s1795_s11 = sshll.u32 %s1888_s10, 4  ;;  %s1796_s11 = int_to_ptr.vmem [resolvable:$false] %s1795_s11 }
 0x24c   : > { %s1797_s12 = scalar_lea.vmem %s1796_s11, 64  ;;  %p1798_p6 = scmp.lt.s32.totalorder %s1340_s30, %s1796_s11 }
 0x24d   : > { %p1793_p4 = pnand %p1792_p2, %p1963_p3  ;;  %p1799_p7 = scmp.lt.s32.totalorder %s1797_s12, %s1791_s9 }
 0x24f   : > { %p1794_p5 = pneg %p1793_p4  ;;  %p1800_p8 = por %p1799_p7, %p1798_p6 }
 0x251   : > { %p1801_p10 = pnand %p1800_p8, %p1794_p5 }
 0x253   : > { %1804 = shalt.err (!%p1801_p10)
}
 0x254   : > { %s1805_s19 = scalar_lea.hbm %s1337_s29, 32  ;;  %s1809_s7 = scalar_lea.hbm %s2433_s4, 64 }
 0x255   : > { %p1806_p11 = scmp.ne.s32.totalorder %s1337_s29, %s1805_s19  ;;  %p1810_p0 = scmp.lt.s32.totalorder %s1337_s29, %s2433_s4 }
 0x256   : > { %p1811_p1 = scmp.lt.s32.totalorder %s1809_s7, %s1805_s19 }
 0x257   : > { %p1807_p12 = pnand %p1806_p11, %p1963_p3 }
 0x258   : > { %p1812_p2 = por %p1811_p1, %p1810_p0 }
 0x259   : > { %p1808_p13 = pneg %p1807_p12 }
 0x25b   : > { %p1813_p4 = pnand %p1812_p2, %p1808_p13 }
 0x25d   : > { %1816 = shalt.err (!%p1813_p4)
}
 0x25e   : > { %1717 = dma.vmem_to_hbm [thread:$0]  (%p1963_p3), %s1340_s30, 32, %s1337_s29, %s1325_s8  }
 0x25f PF: > { %p1723_p5 = scmp.ge.s32.totalorder %s1883_s22, 2  ;;  %s1351_s18 = sand.u32 1, %s1855_s15  }
 0x260   : > { %s1352_s24 = scalar_lea.sflag [#allocation4], %s1351_s18 }
 0x261   : > { %p1720_p6 = pnand %p1723_p5, %p1973_p9 }
 0x263   : > { %p1721_p7 = pneg %p1720_p6 }
 0x265   : > { %1850 = dma.done.wait (%p1721_p7), %s1352_s24, 32  }
 0x266   : > { %1852 = vsyncadd (%p1721_p7), %s1352_s24, 4294967264  ;;  %s17_s22 = sadd.s32 1, %s1883_s22   ;;  %s2438_s27 = sld [smem:[#allocation6_spill]] }
 0x267   : > { %p14_p8 = scmp.ge.s32.totalorder %s17_s22, 6   ;;  %s2439_s15 = smov %s1859_s16 }
 0x268   : > { %s2440_s16 = smov %s1863_s17  ;;  %s2441_s17 = smov %s1981_s5 }
 0x269   : > { %s2442_s18 = smov %s1875_s20  ;;  %s2443_s19 = smov %s1879_s21 }
 0x26a   : > { %s2444_s20 = smov %s2447_s25  ;;  %16 = sbr.rel (!%p14_p8) target bundleno = 5 (0x5), region = 82 }
 0x26c   : > { %s2445_s21 = smov %s2438_s27 }
 0x26f   :  { %1357 = vsyncpa [#allocation4], 1 }
 0x270   :  { %1359 = vsyncpa [#allocation4 + $0x1], 1 }

</bundles_post_ra>
